<compile_context>
chip_gen: v7x
topology: tpu7x:2x2x1
jax: 0.10.0
libtpu: 0.0.40
codegen_flags: <defaults>
</compile_context>

<pallas_src>
import functools

import jax
import jax.numpy as jnp
from jax import lax
from jax.experimental import pallas as pl
from jax.experimental.pallas import tpu as pltpu

COMPUTE_DTYPE = jnp.bfloat16  # matmul operand dtype; accumulation is always f32


# ---------------------------------------------------------------------------
# Fused Pallas kernel:
#   [conv3-as-matmul ->] flatten_linear -> (split-concat) fc1 -> fc2 -> fc3
# All weights are whole-array VMEM blocks (working set << VMEM on v5e/v6e/v7x).
# ---------------------------------------------------------------------------
def _head_kernel(x_ref, s_ref, *refs, fuse_conv3):
    if fuse_conv3:
        (c3_w_ref, c3_b_ref,
         fl_w_ref, fl_b_ref,
         fc1_wx_ref, fc1_ws_ref, fc1_b_ref,
         fc2_w_ref, fc2_b_ref,
         fc3_w_ref, fc3_b_ref,
         o_ref) = refs
    else:
        (fl_w_ref, fl_b_ref,
         fc1_wx_ref, fc1_ws_ref, fc1_b_ref,
         fc2_w_ref, fc2_b_ref,
         fc3_w_ref, fc3_b_ref,
         o_ref) = refs

    cdt = fl_w_ref.dtype  # bf16 operands, f32 MXU accumulation (f32 epilogues: v5e-safe)
    x = x_ref[...]

    if fuse_conv3:
        # conv3 (3x3, stride 1, 1x1 spatial output) == [M,576] @ [576,64] + bias, ReLU
        x = jnp.dot(x, c3_w_ref[...], preferred_element_type=jnp.float32)
        x = jnp.maximum(x + c3_b_ref[...], 0.0).astype(cdt)          # (M, 64)

    # flatten_linear: Linear + ReLU
    feat = jnp.dot(x, fl_w_ref[...], preferred_element_type=jnp.float32)
    feat = jnp.maximum(feat + fl_b_ref[...], 0.0)                     # (M, 512) f32

    # fc1 over concat([feat, symbolic]) == feat @ W_feat + symbolic @ W_sym
    h = jnp.dot(feat.astype(cdt), fc1_wx_ref[...], preferred_element_type=jnp.float32)
    h = h + jnp.dot(s_ref[...], fc1_ws_ref[...], preferred_element_type=jnp.float32)
    h = jnp.maximum(h + fc1_b_ref[...], 0.0)                          # (M, 128) f32

    # fc2 + ReLU
    h = jnp.dot(h.astype(cdt), fc2_w_ref[...], preferred_element_type=jnp.float32)
    h = jnp.maximum(h + fc2_b_ref[...], 0.0)                          # (M, 128) f32

    # fc3 (output columns zero-padded to 128 for lane-dense stores)
    out = jnp.dot(h.astype(cdt), fc3_w_ref[...], preferred_element_type=jnp.float32)
    o_ref[...] = (out + fc3_b_ref[...]).astype(o_ref.dtype)


def _choose_tm(m_pad):
    # Keep tiles big (per-grid-step overhead ~0.35us); only tile when batch is large.
    for tm in (1024, 512, 256):
        if m_pad >= tm and m_pad % tm == 0:
            return tm
    return m_pad


def _fused_head(x_flat, symbolic, kp):
    """x_flat: [M_pad, K0] bf16, symbolic: [M_pad, sym_pad] bf16."""
    m_pad = x_flat.shape[0]
    out_pad = kp["fc3_w"].shape[1]
    fuse_conv3 = "c3_wm" in kp

    if fuse_conv3:
        weights = (kp["c3_wm"], kp["c3_bm"],
                   kp["fl_w"], kp["fl_b"],
                   kp["fc1_wx"], kp["fc1_ws"], kp["fc1_b"],
                   kp["fc2_w"], kp["fc2_b"],
                   kp["fc3_w"], kp["fc3_b"])
    else:
        weights = (kp["fl_w"], kp["fl_b"],
                   kp["fc1_wx"], kp["fc1_ws"], kp["fc1_b"],
                   kp["fc2_w"], kp["fc2_b"],
                   kp["fc3_w"], kp["fc3_b"])

    args = (x_flat, symbolic) + weights
    tm = _choose_tm(m_pad)
    grid = (m_pad // tm,)

    xmap = lambda i: (i, 0)   # batch-tiled operands / output
    wmap = lambda i: (0, 0)   # weights: same block every step (stay resident)

    in_specs = ([pl.BlockSpec((tm, x_flat.shape[1]), xmap),
                 pl.BlockSpec((tm, symbolic.shape[1]), xmap)]
                + [pl.BlockSpec(w.shape, wmap) for w in weights])
    out_specs = pl.BlockSpec((tm, out_pad), xmap)

    # Advisory cost estimate for XLA's scheduler (5-6 MXU matmuls + HBM traffic).
    mat_ws = [w for w in weights if w.ndim == 2 and w.shape[0] > 1]
    flops = 2 * m_pad * sum(w.shape[0] * w.shape[1] for w in mat_ws)
    bytes_accessed = (sum(int(a.size) * a.dtype.itemsize for a in args)
                      + m_pad * out_pad * 4)

    return pl.pallas_call(
        functools.partial(_head_kernel, fuse_conv3=fuse_conv3),
        out_shape=jax.ShapeDtypeStruct((m_pad, out_pad), jnp.float32),
        grid=grid,
        in_specs=in_specs,
        out_specs=out_specs,
        compiler_params=pltpu.CompilerParams(
            dimension_semantics=("parallel",)),   # both v7x TCs at large batch
        cost_estimate=pl.CostEstimate(
            flops=flops, transcendentals=0, bytes_accessed=bytes_accessed),
    )(*args)


# ---------------------------------------------------------------------------
# Conv trunk: conv1/conv2 as XLA NHWC convs (bias+ReLU fused by XLA).
# ---------------------------------------------------------------------------
def _conv_relu(x, w_hwio, b, stride):
    y = lax.conv_general_dilated(
        x, w_hwio,
        window_strides=(stride, stride),
        padding="VALID",
        dimension_numbers=("NHWC", "HWIO", "NHWC"),
        preferred_element_type=jnp.float32)
    return jnp.maximum(y + b, 0.0)


# ---------------------------------------------------------------------------
# Parameter init (PyTorch-layout, deterministic) and one-time TPU prep.
# ---------------------------------------------------------------------------
def init_linear(key, in_dim, out_dim):
    k1, k2 = jax.random.split(key)
    bound = 1.0 / float(in_dim) ** 0.5
    w = jax.random.uniform(k1, (in_dim, out_dim), jnp.float32, -bound, bound)
    b = jax.random.uniform(k2, (out_dim,), jnp.float32, -bound, bound)
    return w, b


def init_conv(key, oc, ic, kh, kw):
    k1, k2 = jax.random.split(key)
    fan_in = ic * kh * kw
    bound = 1.0 / float(fan_in) ** 0.5
    w = jax.random.uniform(k1, (oc, ic, kh, kw), jnp.float32, -bound, bound)
    b = jax.random.uniform(k2, (oc,), jnp.float32, -bound, bound)
    return w, b


def init_params(key, n_input_channels, n_flatten, symbolic_dim, action_dim,
                features_dim=512, hidden_dim=128):
    keys = jax.random.split(key, 7)
    p = {}
    p["c1_w"], p["c1_b"] = init_conv(keys[0], 32, n_input_channels, 8, 8)
    p["c2_w"], p["c2_b"] = init_conv(keys[1], 64, 32, 4, 4)
    p["c3_w"], p["c3_b"] = init_conv(keys[2], 64, 64, 3, 3)
    p["fl_w"], p["fl_b"] = init_linear(keys[3], n_flatten, features_dim)
    p["fc1_w"], p["fc1_b"] = init_linear(keys[4], features_dim + symbolic_dim, hidden_dim)
    p["fc2_w"], p["fc2_b"] = init_linear(keys[5], hidden_dim, hidden_dim)
    p["fc3_w"], p["fc3_b"] = init_linear(keys[6], hidden_dim, action_dim)
    return p


def prepare_params(params, obs_hw, compute_dtype=COMPUTE_DTYPE, out_pad=128):
    """One-time conversion of torch-layout params to TPU-friendly layouts:
    conv1/conv2 weights -> HWIO bf16; conv3 -> [KH*KW*IC, OC] matrix for the
    fused head (when its output is 1x1); flatten_linear rows permuted from
    NCHW-flatten (c,h,w) order to NHWC-flatten (h,w,c) order; fc1 split into
    (feat | symbolic) with the symbolic K zero-padded to a multiple of 16;
    fc3 zero-padded to 128 output lanes; biases kept in f32 as (1, N)."""
    H, W = obs_hw
    oh1, ow1 = (H - 8) // 4 + 1, (W - 8) // 4 + 1
    oh2, ow2 = (oh1 - 4) // 2 + 1, (ow1 - 4) // 2 + 1
    oh3, ow3 = (oh2 - 3) // 1 + 1, (ow2 - 3) // 1 + 1

    kp = {}
    for name in ("c1", "c2"):
        kp[name + "_w"] = jnp.transpose(params[name + "_w"], (2, 3, 1, 0)).astype(compute_dtype)
        kp[name + "_b"] = params[name + "_b"].astype(jnp.float32)

    c3_oc = params["c3_w"].shape[0]
    fuse_conv3 = (oh3 == 1 and ow3 == 1)
    c3_hwio = jnp.transpose(params["c3_w"], (2, 3, 1, 0))           # (3,3,IC,OC)
    if fuse_conv3:
        # rows in (h, w, ic) order == NHWC flatten order of conv2's output
        kp["c3_wm"] = c3_hwio.reshape(-1, c3_oc).astype(compute_dtype)   # (576, 64)
        kp["c3_bm"] = params["c3_b"].reshape(1, -1).astype(jnp.float32)
    else:
        kp["c3_w"] = c3_hwio.astype(compute_dtype)
        kp["c3_b"] = params["c3_b"].astype(jnp.float32)

    features_dim = params["fl_w"].shape[1]
    assert c3_oc * oh3 * ow3 == params["fl_w"].shape[0], (
        "obs_hw inconsistent with n_flatten used to initialize flatten_linear")
    fl_w = params["fl_w"].reshape(c3_oc, oh3, ow3, features_dim)
    fl_w = jnp.transpose(fl_w, (1, 2, 0, 3)).reshape(c3_oc * oh3 * ow3, features_dim)
    kp["fl_w"] = fl_w.astype(compute_dtype)
    kp["fl_b"] = params["fl_b"].reshape(1, -1).astype(jnp.float32)

    hidden_dim = params["fc1_w"].shape[1]
    sym_dim = params["fc1_w"].shape[0] - features_dim
    sym_pad = max(16, ((sym_dim + 15) // 16) * 16)     # bf16 sublane packing
    kp["fc1_wx"] = params["fc1_w"][:features_dim].astype(compute_dtype)
    fc1_ws = jnp.zeros((sym_pad, hidden_dim), jnp.float32)
    fc1_ws = fc1_ws.at[:sym_dim].set(params["fc1_w"][features_dim:])
    kp["fc1_ws"] = fc1_ws.astype(compute_dtype)
    kp["fc1_b"] = params["fc1_b"].reshape(1, -1).astype(jnp.float32)

    kp["fc2_w"] = params["fc2_w"].astype(compute_dtype)
    kp["fc2_b"] = params["fc2_b"].reshape(1, -1).astype(jnp.float32)

    hidden, action_dim = params["fc3_w"].shape
    out_pad = max(out_pad, ((action_dim + 127) // 128) * 128)
    fc3_w = jnp.zeros((hidden, out_pad), jnp.float32).at[:, :action_dim].set(params["fc3_w"])
    fc3_b = jnp.zeros((1, out_pad), jnp.float32).at[0, :action_dim].set(params["fc3_b"])
    kp["fc3_w"] = fc3_w.astype(compute_dtype)
    kp["fc3_b"] = fc3_b
    return kp


# ---------------------------------------------------------------------------
# CNN_with_symbolic.forward
# ---------------------------------------------------------------------------
def cnn_with_symbolic_forward(kparams, observations, symbolic, action_dim):
    cdt = kparams["fl_w"].dtype
    batch = observations.shape[0]
    if symbolic.ndim == 1:
        symbolic = symbolic[None, :]                      # matches torch unsqueeze(0)
    symbolic = jnp.broadcast_to(symbolic, (batch, symbolic.shape[-1]))

    # cnn trunk: Conv(8,s4)+ReLU -> Conv(4,s2)+ReLU, NHWC end-to-end
    # TODO(synk): conv1 could become a space-to-depth GEMM (K=256) for better
    # lane density at large batch; left as an XLA conv for now.
    x = jnp.transpose(observations, (0, 2, 3, 1)).astype(cdt)   # NCHW -> NHWC once
    x = _conv_relu(x, kparams["c1_w"], kparams["c1_b"], 4).astype(cdt)
    x = _conv_relu(x, kparams["c2_w"], kparams["c2_b"], 2)

    if "c3_wm" in kparams:
        # conv3 output is 1x1 -> conv3 is fused into the Pallas head as a matmul.
        x_flat = x.reshape(batch, -1).astype(cdt)          # (M, oh2*ow2*64) e.g. 576
    else:
        x = _conv_relu(x.astype(cdt), kparams["c3_w"], kparams["c3_b"], 1)
        x_flat = x.reshape(batch, -1).astype(cdt)          # NHWC flatten (fl_w rows permuted)

    # pad batch to a multiple of 16 (one bf16 vreg of sublanes); single pad HLO each
    m_pad = max(16, ((batch + 15) // 16) * 16)
    sym_pad = kparams["fc1_ws"].shape[0]
    pm = m_pad - batch
    ps = sym_pad - symbolic.shape[1]
    x_p = jnp.pad(x_flat, ((0, pm), (0, 0))) if pm else x_flat
    s_c = symbolic.astype(cdt)
    s_p = jnp.pad(s_c, ((0, pm), (0, ps))) if (pm or ps) else s_c

    # single fused Pallas kernel: conv3 + flatten_linear + concat + fc1/fc2/fc3
    out = _fused_head(x_p, s_p, kparams)
    return out[:batch, :action_dim]


if __name__ == "__main__":
    # 36x36 obs -> conv spatial 8 -> 3 -> 1, so n_flatten = 64 * 1 * 1 = 64.
    batch = 2
    n_input_channels = 4
    spatial = 36
    symbolic_dim = 8
    action_dim = 6
    features_dim = 512
    hidden_dim = 128
    n_flatten = 64 * 1 * 1

    key = jax.random.PRNGKey(0)
    k_obs, k_sym, k_par = jax.random.split(key, 3)

    observations = jax.random.normal(
        k_obs, (batch, n_input_channels, spatial, spatial), dtype=jnp.float32)
    symbolic = jax.random.normal(k_sym, (batch, symbolic_dim), dtype=jnp.float32)

    params = init_params(k_par, n_input_channels, n_flatten, symbolic_dim,
                         action_dim, features_dim, hidden_dim)
    kparams = prepare_params(params, obs_hw=(spatial, spatial))

    fwd = jax.jit(cnn_with_symbolic_forward, static_argnums=(3,))
    out = fwd(kparams, observations, symbolic, action_dim)
    out = jax.block_until_ready(out)
    assert out.shape == (batch, action_dim), out.shape
    assert bool(jnp.all(jnp.isfinite(out)))
    print("KERNEL_OK")
</pallas_src>

<mosaic_0001>
module attributes {stable_mosaic.version = 11 : i64} {
  func.func @_head_kernel(%arg0: i32, %arg1: memref<16x576xbf16, #tpu.memory_space<vmem>>, %arg2: memref<16x16xbf16, #tpu.memory_space<vmem>>, %arg3: memref<576x64xbf16, #tpu.memory_space<vmem>>, %arg4: memref<1x64xf32, #tpu.memory_space<vmem>>, %arg5: memref<64x512xbf16, #tpu.memory_space<vmem>>, %arg6: memref<1x512xf32, #tpu.memory_space<vmem>>, %arg7: memref<512x128xbf16, #tpu.memory_space<vmem>>, %arg8: memref<16x128xbf16, #tpu.memory_space<vmem>>, %arg9: memref<1x128xf32, #tpu.memory_space<vmem>>, %arg10: memref<128x128xbf16, #tpu.memory_space<vmem>>, %arg11: memref<1x128xf32, #tpu.memory_space<vmem>>, %arg12: memref<128x128xbf16, #tpu.memory_space<vmem>>, %arg13: memref<1x128xf32, #tpu.memory_space<vmem>>, %arg14: memref<16x128xf32, #tpu.memory_space<vmem>>) attributes {dimension_semantics = [#tpu.dimension_semantics<parallel>], iteration_bounds = array<i64: 1>, scalar_prefetch = 0 : i64, scratch_operands = 0 : i64, tpu.core_type = #tpu.core_type<tc>, window_params = [{transform_indices = @transform_0, window_bounds = array<i64: 16, 576>}, {transform_indices = @transform_1, window_bounds = array<i64: 16, 16>}, {pipeline_mode = #tpu.pipeline_mode<synchronous>, transform_indices = @transform_2, window_bounds = array<i64: 576, 64>}, {pipeline_mode = #tpu.pipeline_mode<synchronous>, transform_indices = @transform_3, window_bounds = array<i64: 1, 64>}, {pipeline_mode = #tpu.pipeline_mode<synchronous>, transform_indices = @transform_4, window_bounds = array<i64: 64, 512>}, {pipeline_mode = #tpu.pipeline_mode<synchronous>, transform_indices = @transform_5, window_bounds = array<i64: 1, 512>}, {pipeline_mode = #tpu.pipeline_mode<synchronous>, transform_indices = @transform_6, window_bounds = array<i64: 512, 128>}, {pipeline_mode = #tpu.pipeline_mode<synchronous>, transform_indices = @transform_7, window_bounds = array<i64: 16, 128>}, {pipeline_mode = #tpu.pipeline_mode<synchronous>, transform_indices = @transform_8, window_bounds = array<i64: 1, 128>}, {pipeline_mode = #tpu.pipeline_mode<synchronous>, transform_indices = @transform_9, window_bounds = array<i64: 128, 128>}, {pipeline_mode = #tpu.pipeline_mode<synchronous>, transform_indices = @transform_10, window_bounds = array<i64: 1, 128>}, {pipeline_mode = #tpu.pipeline_mode<synchronous>, transform_indices = @transform_11, window_bounds = array<i64: 128, 128>}, {pipeline_mode = #tpu.pipeline_mode<synchronous>, transform_indices = @transform_12, window_bounds = array<i64: 1, 128>}, {transform_indices = @transform_13, window_bounds = array<i64: 16, 128>}]} {
    %c0 = arith.constant 0 : index
    %c0_0 = arith.constant 0 : index
    %0 = vector.load %arg1[%c0, %c0_0] : memref<16x576xbf16, #tpu.memory_space<vmem>>, vector<16x576xbf16>
    %c0_1 = arith.constant 0 : index
    %c0_2 = arith.constant 0 : index
    %1 = vector.load %arg3[%c0_1, %c0_2] : memref<576x64xbf16, #tpu.memory_space<vmem>>, vector<576x64xbf16>
    %cst = arith.constant dense<0.000000e+00> : vector<16x64xf32>
    %2 = tpu.matmul %0, %1, %cst {dimension_numbers = #tpu.dot_dimension_numbers<[1], [0], [0], [1], [0, 0, 1, 1], [], []>} : vector<16x576xbf16>, vector<576x64xbf16>, vector<16x64xf32> -> vector<16x64xf32>
    %c0_3 = arith.constant 0 : index
    %c0_4 = arith.constant 0 : index
    %3 = vector.load %arg4[%c0_3, %c0_4] : memref<1x64xf32, #tpu.memory_space<vmem>>, vector<1x64xf32>
    %4 = vector.broadcast %3 : vector<1x64xf32> to vector<16x64xf32>
    %5 = arith.addf %2, %4 : vector<16x64xf32>
    %cst_5 = arith.constant 0.000000e+00 : f32
    %6 = vector.broadcast %cst_5 : f32 to vector<16x64xf32>
    %7 = arith.maximumf %5, %6 : vector<16x64xf32>
    %8 = arith.truncf %7 : vector<16x64xf32> to vector<16x64xbf16>
    %c0_6 = arith.constant 0 : index
    %c0_7 = arith.constant 0 : index
    %9 = vector.load %arg5[%c0_6, %c0_7] : memref<64x512xbf16, #tpu.memory_space<vmem>>, vector<64x512xbf16>
    %cst_8 = arith.constant dense<0.000000e+00> : vector<16x512xf32>
    %10 = tpu.matmul %8, %9, %cst_8 {dimension_numbers = #tpu.dot_dimension_numbers<[1], [0], [0], [1], [0, 0, 1, 1], [], []>} : vector<16x64xbf16>, vector<64x512xbf16>, vector<16x512xf32> -> vector<16x512xf32>
    %c0_9 = arith.constant 0 : index
    %c0_10 = arith.constant 0 : index
    %11 = vector.load %arg6[%c0_9, %c0_10] : memref<1x512xf32, #tpu.memory_space<vmem>>, vector<1x512xf32>
    %12 = vector.broadcast %11 : vector<1x512xf32> to vector<16x512xf32>
    %13 = arith.addf %10, %12 : vector<16x512xf32>
    %cst_11 = arith.constant 0.000000e+00 : f32
    %14 = vector.broadcast %cst_11 : f32 to vector<16x512xf32>
    %15 = arith.maximumf %13, %14 : vector<16x512xf32>
    %16 = arith.truncf %15 : vector<16x512xf32> to vector<16x512xbf16>
    %c0_12 = arith.constant 0 : index
    %c0_13 = arith.constant 0 : index
    %17 = vector.load %arg7[%c0_12, %c0_13] : memref<512x128xbf16, #tpu.memory_space<vmem>>, vector<512x128xbf16>
    %cst_14 = arith.constant dense<0.000000e+00> : vector<16x128xf32>
    %18 = tpu.matmul %16, %17, %cst_14 {dimension_numbers = #tpu.dot_dimension_numbers<[1], [0], [0], [1], [0, 0, 1, 1], [], []>} : vector<16x512xbf16>, vector<512x128xbf16>, vector<16x128xf32> -> vector<16x128xf32>
    %c0_15 = arith.constant 0 : index
    %c0_16 = arith.constant 0 : index
    %19 = vector.load %arg2[%c0_15, %c0_16] : memref<16x16xbf16, #tpu.memory_space<vmem>>, vector<16x16xbf16>
    %c0_17 = arith.constant 0 : index
    %c0_18 = arith.constant 0 : index
    %20 = vector.load %arg8[%c0_17, %c0_18] : memref<16x128xbf16, #tpu.memory_space<vmem>>, vector<16x128xbf16>
    %cst_19 = arith.constant dense<0.000000e+00> : vector<16x128xf32>
    %21 = tpu.matmul %19, %20, %cst_19 {dimension_numbers = #tpu.dot_dimension_numbers<[1], [0], [0], [1], [0, 0, 1, 1], [], []>} : vector<16x16xbf16>, vector<16x128xbf16>, vector<16x128xf32> -> vector<16x128xf32>
    %22 = arith.addf %18, %21 : vector<16x128xf32>
    %c0_20 = arith.constant 0 : index
    %c0_21 = arith.constant 0 : index
    %23 = vector.load %arg9[%c0_20, %c0_21] : memref<1x128xf32, #tpu.memory_space<vmem>>, vector<1x128xf32>
    %24 = vector.broadcast %23 : vector<1x128xf32> to vector<16x128xf32>
    %25 = arith.addf %22, %24 : vector<16x128xf32>
    %cst_22 = arith.constant 0.000000e+00 : f32
    %26 = vector.broadcast %cst_22 : f32 to vector<16x128xf32>
    %27 = arith.maximumf %25, %26 : vector<16x128xf32>
    %28 = arith.truncf %27 : vector<16x128xf32> to vector<16x128xbf16>
    %c0_23 = arith.constant 0 : index
    %c0_24 = arith.constant 0 : index
    %29 = vector.load %arg10[%c0_23, %c0_24] : memref<128x128xbf16, #tpu.memory_space<vmem>>, vector<128x128xbf16>
    %cst_25 = arith.constant dense<0.000000e+00> : vector<16x128xf32>
    %30 = tpu.matmul %28, %29, %cst_25 {dimension_numbers = #tpu.dot_dimension_numbers<[1], [0], [0], [1], [0, 0, 1, 1], [], []>} : vector<16x128xbf16>, vector<128x128xbf16>, vector<16x128xf32> -> vector<16x128xf32>
    %c0_26 = arith.constant 0 : index
    %c0_27 = arith.constant 0 : index
    %31 = vector.load %arg11[%c0_26, %c0_27] : memref<1x128xf32, #tpu.memory_space<vmem>>, vector<1x128xf32>
    %32 = vector.broadcast %31 : vector<1x128xf32> to vector<16x128xf32>
    %33 = arith.addf %30, %32 : vector<16x128xf32>
    %cst_28 = arith.constant 0.000000e+00 : f32
    %34 = vector.broadcast %cst_28 : f32 to vector<16x128xf32>
    %35 = arith.maximumf %33, %34 : vector<16x128xf32>
    %36 = arith.truncf %35 : vector<16x128xf32> to vector<16x128xbf16>
    %c0_29 = arith.constant 0 : index
    %c0_30 = arith.constant 0 : index
    %37 = vector.load %arg12[%c0_29, %c0_30] : memref<128x128xbf16, #tpu.memory_space<vmem>>, vector<128x128xbf16>
    %cst_31 = arith.constant dense<0.000000e+00> : vector<16x128xf32>
    %38 = tpu.matmul %36, %37, %cst_31 {dimension_numbers = #tpu.dot_dimension_numbers<[1], [0], [0], [1], [0, 0, 1, 1], [], []>} : vector<16x128xbf16>, vector<128x128xbf16>, vector<16x128xf32> -> vector<16x128xf32>
    %c0_32 = arith.constant 0 : index
    %c0_33 = arith.constant 0 : index
    %39 = vector.load %arg13[%c0_32, %c0_33] : memref<1x128xf32, #tpu.memory_space<vmem>>, vector<1x128xf32>
    %40 = vector.broadcast %39 : vector<1x128xf32> to vector<16x128xf32>
    %41 = arith.addf %38, %40 : vector<16x128xf32>
    %c0_34 = arith.constant 0 : index
    %c0_35 = arith.constant 0 : index
    %42 = vector.load %arg14[%c0_34, %c0_35] : memref<16x128xf32, #tpu.memory_space<vmem>>, vector<16x128xf32>
    tpu.vector_store %arg14[%c0_34, %c0_35], %41 {strides = array<i32>} : memref<16x128xf32, #tpu.memory_space<vmem>>, vector<16x128xf32>,
    return
  }
  func.func @transform_0(%arg0: i32) -> (i32, i32) {
    %c0_i32 = arith.constant 0 : i32
    %c0_i32_0 = arith.constant 0 : i32
    return %arg0, %c0_i32 : i32, i32
  }
  func.func @transform_1(%arg0: i32) -> (i32, i32) {
    %c0_i32 = arith.constant 0 : i32
    %c0_i32_0 = arith.constant 0 : i32
    return %arg0, %c0_i32 : i32, i32
  }
  func.func @transform_2(%arg0: i32) -> (i32, i32) {
    %c0_i32 = arith.constant 0 : i32
    %c0_i32_0 = arith.constant 0 : i32
    %c0_i32_1 = arith.constant 0 : i32
    return %c0_i32, %c0_i32_0 : i32, i32
  }
  func.func @transform_3(%arg0: i32) -> (i32, i32) {
    %c0_i32 = arith.constant 0 : i32
    %c0_i32_0 = arith.constant 0 : i32
    %c0_i32_1 = arith.constant 0 : i32
    return %c0_i32, %c0_i32_0 : i32, i32
  }
  func.func @transform_4(%arg0: i32) -> (i32, i32) {
    %c0_i32 = arith.constant 0 : i32
    %c0_i32_0 = arith.constant 0 : i32
    %c0_i32_1 = arith.constant 0 : i32
    return %c0_i32, %c0_i32_0 : i32, i32
  }
  func.func @transform_5(%arg0: i32) -> (i32, i32) {
    %c0_i32 = arith.constant 0 : i32
    %c0_i32_0 = arith.constant 0 : i32
    %c0_i32_1 = arith.constant 0 : i32
    return %c0_i32, %c0_i32_0 : i32, i32
  }
  func.func @transform_6(%arg0: i32) -> (i32, i32) {
    %c0_i32 = arith.constant 0 : i32
    %c0_i32_0 = arith.constant 0 : i32
    %c0_i32_1 = arith.constant 0 : i32
    return %c0_i32, %c0_i32_0 : i32, i32
  }
  func.func @transform_7(%arg0: i32) -> (i32, i32) {
    %c0_i32 = arith.constant 0 : i32
    %c0_i32_0 = arith.constant 0 : i32
    %c0_i32_1 = arith.constant 0 : i32
    return %c0_i32, %c0_i32_0 : i32, i32
  }
  func.func @transform_8(%arg0: i32) -> (i32, i32) {
    %c0_i32 = arith.constant 0 : i32
    %c0_i32_0 = arith.constant 0 : i32
    %c0_i32_1 = arith.constant 0 : i32
    return %c0_i32, %c0_i32_0 : i32, i32
  }
  func.func @transform_9(%arg0: i32) -> (i32, i32) {
    %c0_i32 = arith.constant 0 : i32
    %c0_i32_0 = arith.constant 0 : i32
    %c0_i32_1 = arith.constant 0 : i32
    return %c0_i32, %c0_i32_0 : i32, i32
  }
  func.func @transform_10(%arg0: i32) -> (i32, i32) {
    %c0_i32 = arith.constant 0 : i32
    %c0_i32_0 = arith.constant 0 : i32
    %c0_i32_1 = arith.constant 0 : i32
    return %c0_i32, %c0_i32_0 : i32, i32
  }
  func.func @transform_11(%arg0: i32) -> (i32, i32) {
    %c0_i32 = arith.constant 0 : i32
    %c0_i32_0 = arith.constant 0 : i32
    %c0_i32_1 = arith.constant 0 : i32
    return %c0_i32, %c0_i32_0 : i32, i32
  }
  func.func @transform_12(%arg0: i32) -> (i32, i32) {
    %c0_i32 = arith.constant 0 : i32
    %c0_i32_0 = arith.constant 0 : i32
    %c0_i32_1 = arith.constant 0 : i32
    return %c0_i32, %c0_i32_0 : i32, i32
  }
  func.func @transform_13(%arg0: i32) -> (i32, i32) {
    %c0_i32 = arith.constant 0 : i32
    %c0_i32_0 = arith.constant 0 : i32
    return %arg0, %c0_i32 : i32, i32
  }
}

</mosaic_0001>

<bundles_post_ra>
// kernel: cnn_with_symbolic_forward.1
= control target key start
LH: loop header
LB: loop body
LE: loop exit
PB: predicated region body
PF: predicated region fallthrough
CT: control target
= control target key end

     0   :  { %v1769_v33 = vmov 0.0   ;;  %vm1770_vm0 = vmmov 0   ;;  %vm371_vm1 = vcmask 523264   ;;  %v1771_v58 = vmov 0   ;;  %s2222_s2 = inlined_call_operand.vmem [shape: bf16[576,64], index: 2, kind: input, shape index: {}]   ;;  %s2223_s0 = inlined_call_operand.vmem [shape: bf16[16,576], index: 0, kind: input, shape index: {}]   ;;  %s2224_s4 = inlined_call_operand.vmem [shape: bf16[64,512], index: 4, kind: input, shape index: {}]   ;;  %s2225_s7 = inlined_call_operand.vmem [shape: bf16[16,128], index: 7, kind: input, shape index: {}]   ;;  %s2226_s1 = inlined_call_operand.vmem [shape: bf16[16,16], index: 1, kind: input, shape index: {}]   ;;  %s2227_s6 = inlined_call_operand.vmem [shape: bf16[512,128], index: 6, kind: input, shape index: {}]   ;;  %s2228_s3 = inlined_call_operand.vmem [shape: f32[1,64], index: 3, kind: input, shape index: {}]   ;;  %s2229_s9 = inlined_call_operand.vmem [shape: bf16[128,128], index: 9, kind: input, shape index: {}]   ;;  %s2230_s5 = inlined_call_operand.vmem [shape: f32[1,512], index: 5, kind: input, shape index: {}]   ;;  %s2231_s11 = inlined_call_operand.vmem [shape: bf16[128,128], index: 11, kind: input, shape index: {}]   ;;  %s2232_s8 = inlined_call_operand.vmem [shape: f32[1,128], index: 8, kind: input, shape index: {}]   ;;  %s2233_s10 = inlined_call_operand.vmem [shape: f32[1,128], index: 10, kind: input, shape index: {}]   ;;  %s2234_s12 = inlined_call_operand.vmem [shape: f32[1,128], index: 12, kind: input, shape index: {}]   ;;  %s2235_s13 = inlined_call_operand.vmem [shape: f32[16,128], index: 13, kind: output, shape index: {}]  }
   0x1   :  { %v1652_v0 = vld [vmem:[%s2222_s2 + $0x40] sm:$0xff]   ;;  %v1656_v4 = vld [vmem:[%s2222_s2 + $0x48] sm:$0xff]   ;;  %v1660_v8 = vld [vmem:[%s2222_s2 + $0x50] sm:$0xff]   ;;  %vm799_vm2 = vcmask 130048  }
   0x2   :  { %v1653_v1 = vld [vmem:[%s2222_s2] sm:$0xff]   ;;  %1478 = vmatprep.subr.bf16.mxu0 %v1652_v0  ;;  %v1657_v5 = vld [vmem:[%s2222_s2 + $0x8] sm:$0xff]   ;;  %v1661_v9 = vld [vmem:[%s2222_s2 + $0x10] sm:$0xff]  }
   0x3   :  { %v1654_v2 = vld [vmem:[%s2222_s2 + $0xc0] sm:$0xff]   ;;  %1479 = vmatpush3.bf16.msra.mxu0 %v1653_v1  ;;  %v1658_v6 = vld [vmem:[%s2222_s2 + $0xc8] sm:$0xff]   ;;  %v1662_v10 = vld [vmem:[%s2222_s2 + $0xd0] sm:$0xff]  }
   0x4   :  { %v1655_v3 = vld [vmem:[%s2222_s2 + $0x80] sm:$0xff]   ;;  %1500 = vmatprep.subr.bf16.mxu1 %v1654_v2  ;;  %1480 = vmatprep.subr.bf16.mxu0 %v1656_v4  ;;  %v1659_v7 = vld [vmem:[%s2222_s2 + $0x88] sm:$0xff]   ;;  %v1663_v11 = vld [vmem:[%s2222_s2 + $0x90] sm:$0xff]  }
   0x5   :  { %1501 = vmatpush3.bf16.msra.mxu1 %v1655_v3  ;;  %v1664_v12 = vld [vmem:[%s2222_s2 + $0x58] sm:$0xff]   ;;  %v1668_v16 = vld [vmem:[%s2222_s2 + $0x60] sm:$0xff]   ;;  %v1672_v20 = vld [vmem:[%s2222_s2 + $0x68] sm:$0xff]  }
   0x6   :  { %1502 = vmatprep.subr.bf16.mxu1 %v1658_v6  ;;  %v1665_v13 = vld [vmem:[%s2222_s2 + $0x18] sm:$0xff]   ;;  %v1669_v17 = vld [vmem:[%s2222_s2 + $0x20] sm:$0xff]   ;;  %v1673_v21 = vld [vmem:[%s2222_s2 + $0x28] sm:$0xff]  }
   0x7   :  { %1481 = vmatpush3.bf16.msra.mxu0 %v1657_v5  ;;  %v1666_v14 = vld [vmem:[%s2222_s2 + $0xd8] sm:$0xff]   ;;  %v1670_v18 = vld [vmem:[%s2222_s2 + $0xe0] sm:$0xff]   ;;  %v1674_v22 = vld [vmem:[%s2222_s2 + $0xe8] sm:$0xff]  }
   0x8   :  { %1482 = vmatprep.subr.bf16.mxu0 %v1660_v8  ;;  %v1667_v15 = vld [vmem:[%s2222_s2 + $0x98] sm:$0xff]   ;;  %v1671_v19 = vld [vmem:[%s2222_s2 + $0xa0] sm:$0xff]   ;;  %v1675_v23 = vld [vmem:[%s2222_s2 + $0xa8] sm:$0xff]  }
   0x9   :  { %1503 = vmatpush3.bf16.msra.mxu1 %v1659_v7  ;;  %v1676_v24 = vld [vmem:[%s2222_s2 + $0x70] sm:$0xff]   ;;  %v1680_v28 = vld [vmem:[%s2222_s2 + $0x78] sm:$0xff]   ;;  %v1689_v36 = vld [vmem:[%s2223_s0 + $0xc] ss:$20 sps:$4 sm:$0xff]  }
   0xa   :  { %1504 = vmatprep.subr.bf16.mxu1 %v1662_v10  ;;  %v1677_v25 = vld [vmem:[%s2222_s2 + $0x30] sm:$0xff]   ;;  %v1681_v29 = vld [vmem:[%s2222_s2 + $0x38] sm:$0xff]   ;;  %v1690_v37 = vld [vmem:[%s2222_s2 + $0x100] sm:$0xff]   ;;  %448 = vmatprep.mubr.bf16.mxu1 %v1689_v36 }
   0xb   :  { %1483 = vmatpush3.bf16.msra.mxu0 %v1661_v9  ;;  %v1678_v26 = vld [vmem:[%s2222_s2 + $0xf0] sm:$0xff]   ;;  %v1682_v30 = vld [vmem:[%s2222_s2 + $0xf8] sm:$0xff]   ;;  %v1691_v38 = vld [vmem:[%s2222_s2 + $0x108] sm:$0xff]  }
   0xc   :  { %1484 = vmatprep.subr.bf16.mxu0 %v1664_v12  ;;  %v1679_v27 = vld [vmem:[%s2222_s2 + $0xb0] sm:$0xff]   ;;  %v1685_v32 = vld [vmem:[%s2223_s0 + $0x4] ss:$20 sps:$4 sm:$0xff]   ;;  %v1687_v35 = vld [vmem:[%s2223_s0 + $0x8] ss:$20 sps:$4 sm:$0xff]  }
   0xd   :  { %1505 = vmatpush3.bf16.msra.mxu1 %v1663_v11  ;;  %v1683_v31 = vld [vmem:[%s2223_s0] ss:$20 sps:$4 sm:$0xff]   ;;  %v1686_v34 = vld [vmem:[%s2222_s2 + $0xb8] sm:$0xff]   ;;  %407 = vmatprep.mubr.bf16.mxu0 %v1685_v32  ;;  %v1694_v41 = vld [vmem:[%s2223_s0 + $0x10] ss:$20 sps:$4 sm:$0xff]  }
   0xe   :  { %1506 = vmatprep.subr.bf16.mxu1 %v1666_v14  ;;  %v1692_v39 = vld [vmem:[%s2222_s2 + $0x110] sm:$0xff]   ;;  %v1693_v40 = vld [vmem:[%s2222_s2 + $0x118] sm:$0xff]   ;;  %v1722_v59 = vld [vmem:[%s2227_s6 + $0xc0] sm:$0xff]  }
   0xf   :  { %1485 = vmatpush3.bf16.msra.mxu0 %v1665_v13  ;;  %v1695_v42 = vld [vmem:[%s2224_s4] ss:$16 sps:$4 sm:$0xff]   ;;  %v1697_v43 = vld [vmem:[%s2224_s4 + $0x4] ss:$16 sps:$4 sm:$0xff]   ;;  %v1698_v44 = vld [vmem:[%s2224_s4 + $0x8] ss:$16 sps:$4 sm:$0xff]  }
  0x10   :  { %1486 = vmatprep.subr.bf16.mxu0 %v1668_v16  ;;  %v1700_v45 = vld [vmem:[%s2224_s4 + $0xc] ss:$16 sps:$4 sm:$0xff]   ;;  %v1701_v46 = vld [vmem:[%s2224_s4 + $0x20] ss:$16 sps:$4 sm:$0xff]   ;;  %v1703_v47 = vld [vmem:[%s2224_s4 + $0x24] ss:$16 sps:$4 sm:$0xff]  }
  0x11   :  { %1507 = vmatpush3.bf16.msra.mxu1 %v1667_v15  ;;  %v1704_v48 = vld [vmem:[%s2224_s4 + $0x28] ss:$16 sps:$4 sm:$0xff]   ;;  %v1706_v49 = vld [vmem:[%s2224_s4 + $0x2c] ss:$16 sps:$4 sm:$0xff]   ;;  %v1709_v50 = vld [vmem:[%s2224_s4 + $0x44] ss:$16 sps:$4 sm:$0xff]  }
  0x12   :  { %1508 = vmatprep.subr.bf16.mxu1 %v1670_v18  ;;  %v1712_v51 = vld [vmem:[%s2224_s4 + $0x4c] ss:$16 sps:$4 sm:$0xff]   ;;  %v1707_v52 = vld [vmem:[%s2224_s4 + $0x40] ss:$16 sps:$4 sm:$0xff]   ;;  %v1710_v53 = vld [vmem:[%s2224_s4 + $0x48] ss:$16 sps:$4 sm:$0xff]  }
  0x13   :  { %1487 = vmatpush3.bf16.msra.mxu0 %v1669_v17  ;;  %v1715_v54 = vld [vmem:[%s2224_s4 + $0x64] ss:$16 sps:$4 sm:$0xff]   ;;  %v1718_v55 = vld [vmem:[%s2224_s4 + $0x6c] ss:$16 sps:$4 sm:$0xff]   ;;  %v1713_v56 = vld [vmem:[%s2224_s4 + $0x60] ss:$16 sps:$4 sm:$0xff]  }
  0x14   :  { %1488 = vmatprep.subr.bf16.mxu0 %v1672_v20  ;;  %v1716_v57 = vld [vmem:[%s2224_s4 + $0x68] ss:$16 sps:$4 sm:$0xff]   ;;  %v1363_v61 = vld [vmem:[%s2228_s3] ss:$0 sm:$0xff] }
  0x15   :  { %1509 = vmatpush3.bf16.msra.mxu1 %v1671_v19  ;;  %v1734_v32 = vld [vmem:[%s2227_s6 + $0xd8] sm:$0xff]  }
  0x16   :  { %1510 = vmatprep.subr.bf16.mxu1 %v1674_v22  ;;  %v1736_v36 = vld [vmem:[%s2227_s6 + $0x98] sm:$0xff]  }
  0x17   :  { %1489 = vmatpush3.bf16.msra.mxu0 %v1673_v21  ;;  %v1719_v21 = vld [vmem:[%s2225_s7] sm:$0xff]  }
  0x18   :  { %1490 = vmatprep.subr.bf16.mxu0 %v1676_v24  ;;  %v1724_v24 = vld [vmem:[%s2227_s6 + $0x80] sm:$0xff]  }
  0x19   :  { %1511 = vmatpush3.bf16.msra.mxu1 %v1675_v23  ;;  %v1721_v23 = vld [vmem:[%s2227_s6 + $0x40] sm:$0xff]  }
  0x1a   :  { %1512 = vmatprep.subr.bf16.mxu1 %v1678_v26  ;;  %v1728_v26 = vld [vmem:[%s2227_s6 + $0x88] sm:$0xff]  }
  0x1b   :  { %1491 = vmatpush3.bf16.msra.mxu0 %v1677_v25  ;;  %v1726_v25 = vld [vmem:[%s2227_s6 + $0xc8] sm:$0xff]  }
  0x1c   :  { %1492 = vmatprep.subr.bf16.mxu0 %v1680_v28  ;;  %v1720_v28 = vld [vmem:[%s2226_s1] sm:$0xff]  }
  0x1d   :  { %1513 = vmatpush3.bf16.msra.mxu1 %v1679_v27  ;;  %v1730_v27 = vld [vmem:[%s2227_s6 + $0xd0] sm:$0xff]  }
  0x1e   :  { %1514 = vmatprep.subr.bf16.mxu1 %v1682_v30  ;;  %v1725_v30 = vld [vmem:[%s2227_s6 + $0x48] sm:$0xff]  }
  0x1f   :  { %1493 = vmatpush3.bf16.msra.mxu0 %v1681_v29  ;;  %v1723_v29 = vld [vmem:[%s2227_s6] sm:$0xff]  }
  0x20   :  { %1591 = vmatprep.subr.bf16.mxu0 %v1769_v33 }
  0x21   :  { %1515 = vmatpush3.bf16.msra.mxu1 %v1686_v34  ;;  %v1727_v34 = vld [vmem:[%s2227_s6 + $0x8] sm:$0xff]  }
  0x22   :  { %408 = vmatmul.mubr.bf16.vlgmr.msra.gmra.mrb[0].mxu0 %v1683_v31  ;;  %622 = vmatprep.subr.bf16.mxu1 %v1697_v43  ;;  %v1732_v31 = vld [vmem:[%s2227_s6 + $0x90] sm:$0xff]   ;;  %v1737_v43 = vld [vmem:[%s2227_s6 + $0x60] sm:$0xff]  }
  0x23   :  { %1599 = vmatprep.mubr.msk.bf16.mxu0 %vm1770_vm0, %v1769_v33  ;;  %1592 = vmatpush3.bf16.msra.mxu0 %v1690_v37  ;;  %v1738_v37 = vld [vmem:[%s2227_s6 + $0xe0] sm:$0xff]  }
  0x24   :  { %449 = vmatmul.mubr.bf16.vlgmr.msra.gmra.mrb[0].mxu1 %v1687_v35  ;;  %1593 = vmatprep.subr.bf16.mxu0 %v1769_v33  ;;  %v1729_v35 = vld [vmem:[%s2227_s6 + $0x50] sm:$0xff]  }
  0x25   :  { %623 = vmatpush1.bf16.msra.mxu1 %v1695_v42  ;;  %654 = vmatprep.mubr.bf16.mxu1 %v1771_v58  ;;  %v1735_v42 = vld [vmem:[%s2227_s6 + $0x18] sm:$0xff]  }
  0x26   :  { %624 = vmatprep.subr.bf16.mxu1 %v1703_v47  ;;  %v1744_v47 = vld [vmem:[%s2227_s6 + $0xa8] sm:$0xff]  }
  0x27   :  { %1594 = vmatpush3.bf16.msra.mxu0 %v1691_v38  ;;  %v1731_v38 = vld [vmem:[%s2227_s6 + $0x10] sm:$0xff]  }
  0x28   :  { %1595 = vmatprep.subr.bf16.mxu0 %v1769_v33 }
  0x29   :  { %625 = vmatpush1.bf16.msra.mxu1 %v1701_v46  ;;  %v1743_v46 = vld [vmem:[%s2227_s6 + $0x28] sm:$0xff]  }
  0x2a   :  { %626 = vmatprep.subr.bf16.mxu1 %v1709_v50  ;;  %v1747_v50 = vld [vmem:[%s2227_s6 + $0x30] sm:$0xff]  }
  0x2b   :  { %1596 = vmatpush3.bf16.msra.mxu0 %v1692_v39  ;;  %v1733_v39 = vld [vmem:[%s2227_s6 + $0x58] sm:$0xff]  }
  0x2c   :  { %1597 = vmatprep.subr.bf16.mxu0 %v1769_v33 }
  0x2d   :  { %627 = vmatpush1.bf16.msra.mxu1 %v1707_v52  ;;  %v1749_v52 = vld [vmem:[%s2227_s6 + $0x78] sm:$0xff]  }
  0x2e   :  { %628 = vmatprep.subr.bf16.mxu1 %v1715_v54  ;;  %v1751_v54 = vld [vmem:[%s2227_s6 + $0x38] sm:$0xff]  }
  0x2f   :  { %1598 = vmatpush3.bf16.msra.mxu0 %v1693_v40  ;;  %v1740_v40 = vld [vmem:[%s2227_s6 + $0xa0] sm:$0xff]  }
  0x30   :  { %665 = vmatprep.subr.bf16.mxu0 %v1700_v45  ;;  %v1741_v45 = vld [vmem:[%s2227_s6 + $0x68] sm:$0xff]  }
  0x31   :  { %629 = vmatpush1.bf16.msra.mxu1 %v1713_v56  ;;  %v519_v56 = vlaneseq }
  0x32   :  { %1600 = vmatmul.mubr.msk.bf16.vlgmr.msra.gmra.mrb[4].mxu0 %vm371_vm1, %v1694_v41  ;;  %1603 = vmatprep.subr.bf16.mxu1 %v1769_v33  ;;  %v1742_v41 = vld [vmem:[%s2227_s6 + $0xe8] sm:$0xff]  }
  0x33   :  { %666 = vmatpush1.bf16.msra.mxu0 %v1698_v44  ;;  %697 = vmatprep.mubr.bf16.mxu0 %v1771_v58  ;;  %v1739_v44 = vld [vmem:[%s2227_s6 + $0x20] sm:$0xff]  }
  0x34   :  { %667 = vmatprep.subr.bf16.mxu0 %v1706_v49  ;;  %v1746_v49 = vld [vmem:[%s2227_s6 + $0xf0] sm:$0xff]  }
  0x37   :  { %668 = vmatpush1.bf16.msra.mxu0 %v1704_v48  ;;  %v1745_v48 = vld [vmem:[%s2227_s6 + $0x70] sm:$0xff]  }
  0x38   :  { %669 = vmatprep.subr.bf16.mxu0 %v1712_v51  ;;  %v1748_v51 = vld [vmem:[%s2227_s6 + $0xb0] sm:$0xff]  }
  0x3b   :  { %670 = vmatpush1.bf16.msra.mxu0 %v1710_v53  ;;  %v1750_v53 = vld [vmem:[%s2227_s6 + $0xf8] sm:$0xff]  }
  0x3c   :  { %671 = vmatprep.subr.bf16.mxu0 %v1718_v55  ;;  %v1752_v55 = vld [vmem:[%s2227_s6 + $0xb8] sm:$0xff]  }
  0x3f   :  { %672 = vmatpush1.bf16.msra.mxu0 %v1716_v57  ;;  %v520_v57 = vshrl.u32 %v519_v56, 7 }
  0x40   :  { %1551 = vmatprep.subr.bf16.mxu0 %v1722_v59 }
  0x41   :  { %v521_v58 = vsub.s32 0, %v520_v57  ;;  %v529_v59 = vsub.s32 2, %v520_v57 }
  0xf5   :  { %v1494_v60 = vpop.f32.mrb[0].mxu0 }
  0xf6   :  { %v1495_v62 = vpop.f32.mrb[1].mxu0 }
  0xf7   :  { %v1496_v63 = vadd.f32 %v1495_v62, %v1494_v60  ;;  %v1497_v0 = vpop.f32.mrb[2].mxu0  ;;  %v1516_v1 = vpop.f32.mrb[0].mxu1  ;;  %v517_v60 = vld [vmem:[%s2230_s5] sm:$0xf]  ;;  %v533_v62 = vsub.s32 3, %v520_v57 }
  0xf8   :  { %v1498_v2 = vpop.f32.mrb[3].mxu0  ;;  %v1517_v5 = vpop.f32.mrb[1].mxu1 }
  0xf9   :  { %v410_v3 = vadd.f32 %v1496_v63, %v1363_v61  ;;  %v1499_v4 = vadd.f32 %v1498_v2, %v1497_v0  ;;  %v1518_v6 = vadd.f32 %v1517_v5, %v1516_v1  ;;  %v1519_v7 = vpop.f32.mrb[2].mxu1  ;;  %v522_v63 = vrot.slane %v517_v60, %v521_v58 }
  0xfa   :  { %v1520_v9 = vpop.f32.mrb[3].mxu1  ;;  %v530_v0 = vrot.slane %v517_v60, %v529_v59  ;;  %v534_v2 = vrot.slane %v517_v60, %v533_v62 }
  0xfb   :  { %v413_v8 = vadd.f32 %v1499_v4, %v1363_v61  ;;  %v1521_v10 = vadd.f32 %v1520_v9, %v1519_v7  ;;  %v451_v11 = vadd.f32 %v1518_v6, %v410_v3  ;;  %v525_v61 = vsub.s32 1, %v520_v57 }
  0xfd   :  { %v454_v12 = vadd.f32 %v1521_v10, %v413_v8  ;;  %v526_v1 = vrot.slane %v517_v60, %v525_v61 }
 0x105   :  { %v491_v13 = vpop.f32.mrb[4].mxu0 }
 0x106   :  { %v492_v14 = vadd.f32 %v491_v13, %v451_v11  ;;  %v1601_v15 = vpop.f32.mrb[5].mxu0 }
 0x107   :  { %v494_v16 = vpop.f32.mrb[6].mxu0 }
 0x108   :  { %v495_v17 = vadd.f32 %v494_v16, %v454_v12  ;;  %v1602_v18 = vpop.f32.mrb[7].mxu0  ;;  %v498_v19 = vmax.f32 %v492_v14, 0.0 }
 0x10a   :  { %v499_v20 = vmax.f32 %v495_v17, 0.0 }
 0x10c   :  { %v500_v22 = vpack.c.bf16 %v499_v20, %v498_v19 }
 0x10e   :  { %1422 = vmatmul.mubr.msk.bf16.vlgmr.msra.gmra.mrb[4].mxu1 %vm371_vm1, %v500_v22  ;;  %1423 = vmatmul.mubr.msk.bf16.vlgmr.msra.gmra.mrb[8].mxu0 %vm371_vm1, %v500_v22 }
 0x10f   :  { %1604 = vmatpush3.bf16.msra.mxu1 %v1719_v21  ;;  %1605 = vmatprep.mubr.msk.bf16.mxu1 %vm1770_vm0, %v1769_v33 }
 0x110   :  { %1529 = vmatprep.subr.bf16.mxu1 %v1721_v23  ;;  %1552 = vmatpush3.bf16.msra.mxu0 %v1724_v24 }
 0x111   :  { %1553 = vmatprep.subr.bf16.mxu0 %v1726_v25 }
 0x114   :  { %1554 = vmatpush3.bf16.msra.mxu0 %v1728_v26 }
 0x115   :  { %1555 = vmatprep.subr.bf16.mxu0 %v1730_v27 }
 0x116   :  { %1606 = vmatmul.mubr.msk.bf16.vlgmr.msra.gmra.mrb[8].mxu1 %vm799_vm2, %v1720_v28 }
 0x117   :  { %1530 = vmatpush3.bf16.msra.mxu1 %v1723_v29 }
 0x118   :  { %1531 = vmatprep.subr.bf16.mxu1 %v1725_v30  ;;  %1556 = vmatpush3.bf16.msra.mxu0 %v1732_v31 }
 0x119   :  { %1557 = vmatprep.subr.bf16.mxu0 %v1734_v32  ;;  %v1753_v32 = vld [vmem:[%s2229_s9] sm:$0xff]  }
 0x11b   :  { %1532 = vmatpush3.bf16.msra.mxu1 %v1727_v34 }
 0x11c   :  { %1533 = vmatprep.subr.bf16.mxu1 %v1729_v35  ;;  %1558 = vmatpush3.bf16.msra.mxu0 %v1736_v36 }
 0x11d   :  { %1559 = vmatprep.subr.bf16.mxu0 %v1738_v37  ;;  %v1754_v37 = vld [vmem:[%s2229_s9 + $0x8] sm:$0xff]  }
 0x11f   :  { %1534 = vmatpush3.bf16.msra.mxu1 %v1731_v38  ;;  %v1755_v38 = vld [vmem:[%s2229_s9 + $0x10] sm:$0xff]  }
 0x120   :  { %1535 = vmatprep.subr.bf16.mxu1 %v1733_v39  ;;  %1560 = vmatpush3.bf16.msra.mxu0 %v1740_v40  ;;  %v1756_v39 = vld [vmem:[%s2229_s9 + $0x18] sm:$0xff]   ;;  %v1757_v40 = vld [vmem:[%s2229_s9 + $0x20] sm:$0xff]  }
 0x121   :  { %1561 = vmatprep.subr.bf16.mxu0 %v1742_v41  ;;  %v1758_v41 = vld [vmem:[%s2229_s9 + $0x28] sm:$0xff]  }
 0x123   :  { %1536 = vmatpush3.bf16.msra.mxu1 %v1735_v42  ;;  %v1759_v42 = vld [vmem:[%s2229_s9 + $0x30] sm:$0xff]  }
 0x124   :  { %1537 = vmatprep.subr.bf16.mxu1 %v1737_v43  ;;  %1562 = vmatpush3.bf16.msra.mxu0 %v1744_v47  ;;  %v1760_v43 = vld [vmem:[%s2229_s9 + $0x38] sm:$0xff]  }
 0x125   :  { %1563 = vmatprep.subr.bf16.mxu0 %v1746_v49  ;;  %v1764_v47 = vld [vmem:[%s2231_s11 + $0x18] sm:$0xff]   ;;  %v1766_v49 = vld [vmem:[%s2231_s11 + $0x28] sm:$0xff]  }
 0x127   :  { %1538 = vmatpush3.bf16.msra.mxu1 %v1739_v44  ;;  %v1761_v44 = vld [vmem:[%s2231_s11] sm:$0xff]  }
 0x128   :  { %1539 = vmatprep.subr.bf16.mxu1 %v1741_v45  ;;  %1564 = vmatpush3.bf16.msra.mxu0 %v1748_v51  ;;  %v1762_v45 = vld [vmem:[%s2231_s11 + $0x8] sm:$0xff]  }
 0x129   :  { %1565 = vmatprep.subr.bf16.mxu0 %v1750_v53 }
 0x12b   :  { %1540 = vmatpush3.bf16.msra.mxu1 %v1743_v46  ;;  %v1763_v46 = vld [vmem:[%s2231_s11 + $0x10] sm:$0xff]  }
 0x12c   :  { %1541 = vmatprep.subr.bf16.mxu1 %v1745_v48  ;;  %1566 = vmatpush3.bf16.msra.mxu0 %v1752_v55  ;;  %v1765_v48 = vld [vmem:[%s2231_s11 + $0x20] sm:$0xff]  }
 0x12d   :  { %1629 = vmatprep.subr.bf16.mxu0 %v1769_v33 }
 0x12f   :  { %1542 = vmatpush3.bf16.msra.mxu1 %v1747_v50 }
 0x130   :  { %1543 = vmatprep.subr.bf16.mxu1 %v1749_v52 }
 0x133   :  { %1544 = vmatpush3.bf16.msra.mxu1 %v1751_v54 }
 0x134   :  { %1609 = vmatprep.subr.bf16.mxu1 %v1769_v33 }
 0x1e1   :  { %v656_v3 = vpop.f32.mrb[4].mxu1  ;;  %v699_v4 = vpop.f32.mrb[8].mxu0 }
 0x1e2   :  { %v657_v5 = vadd.f32 %v656_v3, %v522_v63  ;;  %v700_v6 = vadd.f32 %v699_v4, %v530_v0  ;;  %v658_v7 = vpop.f32.mrb[5].mxu1  ;;  %v701_v8 = vpop.f32.mrb[9].mxu0 }
 0x1e3   :  { %v659_v9 = vadd.f32 %v658_v7, %v526_v1  ;;  %v702_v10 = vadd.f32 %v701_v8, %v534_v2  ;;  %v660_v11 = vpop.f32.mrb[6].mxu1  ;;  %v703_v12 = vpop.f32.mrb[10].mxu0  ;;  %v1767_v8 = vld [vmem:[%s2231_s11 + $0x30] sm:$0xff]  }
 0x1e4   :  { %v661_v13 = vadd.f32 %v660_v11, %v522_v63  ;;  %v704_v14 = vadd.f32 %v703_v12, %v530_v0  ;;  %v662_v15 = vpop.f32.mrb[7].mxu1  ;;  %v705_v16 = vpop.f32.mrb[11].mxu0  ;;  %v708_v19 = vmax.f32 %v657_v5, 0.0  ;;  %v710_v20 = vmax.f32 %v700_v6, 0.0  ;;  %v1459_v63 = vld [vmem:[%s2232_s8] ss:$0 sm:$0xff] }
 0x1e5   :  { %v663_v17 = vadd.f32 %v662_v15, %v526_v1  ;;  %v706_v18 = vadd.f32 %v705_v16, %v534_v2  ;;  %v709_v23 = vmax.f32 %v659_v9, 0.0  ;;  %v711_v24 = vmax.f32 %v702_v10, 0.0  ;;  %v1768_v9 = vld [vmem:[%s2231_s11 + $0x38] sm:$0xff]   ;;  %v1460_v10 = vld [vmem:[%s2233_s10] ss:$0 sm:$0xff] }
 0x1e6   :  { %v712_v21 = vmax.f32 %v661_v13, 0.0  ;;  %v714_v22 = vmax.f32 %v704_v14, 0.0 }
 0x1e7   :  { %v713_v25 = vmax.f32 %v663_v17, 0.0  ;;  %v715_v26 = vmax.f32 %v706_v18, 0.0 }
 0x1e8   :  { %v716_v27 = vpack.c.bf16 %v712_v21, %v708_v19  ;;  %v718_v28 = vpack.c.bf16 %v714_v22, %v710_v20 }
 0x1e9   :  { %v717_v29 = vpack.c.bf16 %v713_v25, %v709_v23  ;;  %v719_v30 = vpack.c.bf16 %v715_v26, %v711_v24  ;;  %v2135_v31 = vpop.f32.mrb[8].mxu1 }
 0x1ea   :  { %v1607_v34 = vpop.f32.mrb[9].mxu1 }
 0x1eb   :  { %1068 = vmatprep.mubr.bf16.mxu1 %v717_v29  ;;  %1109 = vmatprep.mubr.bf16.mxu0 %v719_v30  ;;  %v2140_v35 = vpop.f32.mrb[10].mxu1 }
 0x1ec   :  { %1069 = vmatmul.mubr.bf16.vlgmr.msra.gmra.mrb[12].mxu1 %v716_v27  ;;  %1110 = vmatmul.mubr.bf16.vlgmr.msra.gmra.mrb[12].mxu0 %v718_v28  ;;  %v1608_v36 = vpop.f32.mrb[11].mxu1 }
 0x1ed   :  { %1610 = vmatpush3.bf16.msra.mxu1 %v1753_v32  ;;  %1625 = vmatprep.mubr.msk.bf16.mxu1 %vm1770_vm0, %v1769_v33 }
 0x1ee   :  { %1611 = vmatprep.subr.bf16.mxu1 %v1769_v33  ;;  %1645 = vmatprep.mubr.msk.bf16.mxu0 %vm1770_vm0, %v1769_v33 }
 0x1ef   :  { %1630 = vmatpush3.bf16.msra.mxu0 %v1761_v44 }
 0x1f0   :  { %1631 = vmatprep.subr.bf16.mxu0 %v1769_v33 }
 0x1f1   :  { %1612 = vmatpush3.bf16.msra.mxu1 %v1754_v37 }
 0x1f2   :  { %1613 = vmatprep.subr.bf16.mxu1 %v1769_v33 }
 0x1f3   :  { %1632 = vmatpush3.bf16.msra.mxu0 %v1762_v45 }
 0x1f4   :  { %1633 = vmatprep.subr.bf16.mxu0 %v1769_v33 }
 0x1f5   :  { %1614 = vmatpush3.bf16.msra.mxu1 %v1755_v38 }
 0x1f6   :  { %1615 = vmatprep.subr.bf16.mxu1 %v1769_v33 }
 0x1f7   :  { %1634 = vmatpush3.bf16.msra.mxu0 %v1763_v46 }
 0x1f8   :  { %1635 = vmatprep.subr.bf16.mxu0 %v1769_v33 }
 0x1f9   :  { %1616 = vmatpush3.bf16.msra.mxu1 %v1756_v39 }
 0x1fa   :  { %1617 = vmatprep.subr.bf16.mxu1 %v1769_v33 }
 0x1fb   :  { %1636 = vmatpush3.bf16.msra.mxu0 %v1764_v47 }
 0x1fc   :  { %1637 = vmatprep.subr.bf16.mxu0 %v1769_v33 }
 0x1fd   :  { %1618 = vmatpush3.bf16.msra.mxu1 %v1757_v40 }
 0x1fe   :  { %1619 = vmatprep.subr.bf16.mxu1 %v1769_v33 }
 0x1ff   :  { %1638 = vmatpush3.bf16.msra.mxu0 %v1765_v48 }
 0x200   :  { %1639 = vmatprep.subr.bf16.mxu0 %v1769_v33 }
 0x201   :  { %1620 = vmatpush3.bf16.msra.mxu1 %v1758_v41 }
 0x202   :  { %1621 = vmatprep.subr.bf16.mxu1 %v1769_v33 }
 0x203   :  { %1640 = vmatpush3.bf16.msra.mxu0 %v1766_v49 }
 0x204   :  { %1641 = vmatprep.subr.bf16.mxu0 %v1769_v33 }
 0x205   :  { %1622 = vmatpush3.bf16.msra.mxu1 %v1759_v42 }
 0x206   :  { %1623 = vmatprep.subr.bf16.mxu1 %v1769_v33 }
 0x207   :  { %1642 = vmatpush3.bf16.msra.mxu0 %v1767_v8 }
 0x208   :  { %1643 = vmatprep.subr.bf16.mxu0 %v1769_v33  ;;  %v1469_v33 = vld [vmem:[%s2234_s12] ss:$0 sm:$0xff] }
 0x209   :  { %1624 = vmatpush3.bf16.msra.mxu1 %v1760_v43 }
 0x20b   :  { %1644 = vmatpush3.bf16.msra.mxu0 %v1768_v9 }
 0x2bf   :  { %v1545_v50 = vpop.f32.mrb[12].mxu1  ;;  %v1567_v51 = vpop.f32.mrb[12].mxu0 }
 0x2c0   :  { %v1546_v52 = vpop.f32.mrb[13].mxu1  ;;  %v1568_v53 = vpop.f32.mrb[13].mxu0 }
 0x2c1   :  { %v1547_v54 = vadd.f32 %v1546_v52, %v1545_v50  ;;  %v1569_v55 = vadd.f32 %v1568_v53, %v1567_v51  ;;  %v1548_v56 = vpop.f32.mrb[14].mxu1  ;;  %v1570_v57 = vpop.f32.mrb[14].mxu0 }
 0x2c2   :  { %v1549_v58 = vpop.f32.mrb[15].mxu1  ;;  %v1571_v59 = vpop.f32.mrb[15].mxu0 }
 0x2c3   :  { %v1071_v60 = vadd.f32 %v1547_v54, %v2135_v31  ;;  %v1550_v61 = vadd.f32 %v1549_v58, %v1548_v56  ;;  %v1572_v62 = vadd.f32 %v1571_v59, %v1570_v57 }
 0x2c5   :  { %v1112_v0 = vadd.f32 %v1569_v55, %v1071_v60  ;;  %v1074_v1 = vadd.f32 %v1550_v61, %v2140_v35 }
 0x2c7   :  { %v1125_v2 = vadd.f32 %v1459_v63, %v1112_v0  ;;  %v1115_v3 = vadd.f32 %v1572_v62, %v1074_v1 }
 0x2c9   :  { %v1126_v4 = vadd.f32 %v1459_v63, %v1115_v3  ;;  %v1127_v5 = vmax.f32 %v1125_v2, 0.0 }
 0x2cb   :  { %v1128_v6 = vmax.f32 %v1126_v4, 0.0 }
 0x2cd   :  { %v1129_v7 = vpack.c.bf16 %v1128_v6, %v1127_v5 }
 0x2cf   :  { %1626 = vmatmul.mubr.bf16.vlgmr.msra.gmra.mrb[16].mxu1 %v1129_v7 }
 0x3a2   :  { %v1235_v11 = vpop.f32.mrb[16].mxu1 }
 0x3a3   :  { %v1236_v12 = vadd.f32 %v1460_v10, %v1235_v11  ;;  %v1627_v13 = vpop.f32.mrb[17].mxu1 }
 0x3a4   :  { %v1238_v14 = vpop.f32.mrb[18].mxu1 }
 0x3a5   :  { %v1239_v15 = vadd.f32 %v1460_v10, %v1238_v14  ;;  %v1628_v16 = vpop.f32.mrb[19].mxu1  ;;  %v1242_v17 = vmax.f32 %v1236_v12, 0.0 }
 0x3a7   :  { %v1243_v18 = vmax.f32 %v1239_v15, 0.0 }
 0x3a9   :  { %v1244_v19 = vpack.c.bf16 %v1243_v18, %v1242_v17 }
 0x3ab   :  { %1646 = vmatmul.mubr.bf16.vlgmr.msra.gmra.mrb[16].mxu0 %v1244_v19 }
 0x47e   :  { %v1350_v20 = vpop.f32.mrb[16].mxu0 }
 0x47f   :  { %v1351_v21 = vadd.f32 %v1469_v33, %v1350_v20  ;;  %v1647_v22 = vpop.f32.mrb[17].mxu0 }
 0x480   :  { %v1353_v23 = vpop.f32.mrb[18].mxu0 }
 0x481   :  { %1357 = vst [vmem:[%s2235_s13] sm:$0xff] %v1351_v21  ;;  %v1354_v24 = vadd.f32 %v1469_v33, %v1353_v23  ;;  %v1648_v25 = vpop.f32.mrb[19].mxu0 }
 0x483   :  { %1358 = vst [vmem:[%s2235_s13 + $0x8] sm:$0xff] %v1354_v24 }

</bundles_post_ra>
